<compile_context>
chip_gen: v5e
topology: v5e:2x2
jax: 0.10.0
libtpu: 0.0.40
codegen_flags: <defaults>
</compile_context>

<pallas_src>
import functools

import jax
import jax.numpy as jnp
from jax import lax
from jax.experimental import pallas as pl
from jax.experimental.pallas import tpu as pltpu

EMBED_SIZE = 128
HIDDEN_SIZE = 128
OUTPUT_SIZE = 2


def _rnn_kernel(x_ref, wih_ref, whh_ref, bias_ref, wfc_ref, bfc_ref,
                out_ref, xproj_ref, *, seq_len, batch):
    # (1) Hoisted input projection for ALL timesteps: one (S*B, E) @ (E, H) MXU call,
    #     with the pre-combined (b_ih + b_hh) bias folded in.  Accumulate in f32.
    xproj_ref[...] = (
        jnp.dot(x_ref[...], wih_ref[...], preferred_element_type=jnp.float32)
        + bias_ref[...]
    )

    # (2) Serial recurrence, fully unrolled in-kernel.  Hidden state h stays in vregs
    #     in f32; only the MXU operands are (optionally) narrowed to whh's dtype.
    mxu_dtype = whh_ref.dtype
    hidden = whh_ref.shape[1]

    def step(t, h):
        x_t = xproj_ref[pl.ds(t * batch, batch), :]               # (B, H) f32
        hh = jnp.dot(h.astype(mxu_dtype), whh_ref[...],
                     preferred_element_type=jnp.float32)
        return jnp.tanh(x_t + hh)

    h0 = jnp.zeros((batch, hidden), jnp.float32)
    h_last = lax.fori_loop(0, seq_len, step, h0, unroll=True)

    # (3) Last-step FC into a lane-dense padded (B, 128) output slab (unmasked stores).
    out_ref[...] = (
        jnp.dot(h_last, wfc_ref[...], preferred_element_type=jnp.float32)
        + bfc_ref[...]
    ).astype(out_ref.dtype)


def sentiment_rnn_forward(token_ids, params, *, matmul_dtype=None):
    """token_ids: (B, S) int32.  Returns logits (B, OUTPUT_SIZE) float32.

    matmul_dtype: optional narrower dtype (e.g. jnp.bfloat16) for MXU operands on
    v6e/v7x; accumulation, tanh, hidden carry and the final FC remain float32.
    """
    emb_table = params["embedding"]
    w_ih, w_hh = params["w_ih"], params["w_hh"]
    b_ih, b_hh = params["b_ih"], params["b_hh"]
    w_fc, b_fc = params["w_fc"], params["b_fc"]

    B, S = token_ids.shape
    E = emb_table.shape[1]
    H = w_hh.shape[1]
    O = w_fc.shape[1]
    O_pad = ((O + 127) // 128) * 128          # lane-dense output width

    # Embedding gather directly in time-major order (no post-gather transpose copy),
    # flattened so the hoisted input projection is a single matmul.
    # NOTE: the gather itself stays in XLA glue (same as the original module's
    # nn.Embedding lookup); it could be pulled in-kernel with scalar prefetch if needed.
    x_flat = jnp.take(emb_table, token_ids.T, axis=0).reshape(S * B, E)   # (S*B, E)

    bias = b_ih + b_hh                                      # pre-combined RNN bias (1, H)
    w_fc_pad = jnp.pad(w_fc, ((0, 0), (0, O_pad - O)))      # (H, O_pad)
    b_fc_pad = jnp.pad(b_fc, ((0, 0), (0, O_pad - O)))      # (1, O_pad)

    if matmul_dtype is not None:
        x_flat = x_flat.astype(matmul_dtype)
        w_ih = w_ih.astype(matmul_dtype)
        w_hh = w_hh.astype(matmul_dtype)

    kernel = functools.partial(_rnn_kernel, seq_len=S, batch=B)
    vmem = pl.BlockSpec(memory_space=pltpu.MemorySpace.VMEM)

    out_pad = pl.pallas_call(
        kernel,
        out_shape=jax.ShapeDtypeStruct((B, O_pad), jnp.float32),
        in_specs=[vmem] * 6,
        out_specs=vmem,
        scratch_shapes=[pltpu.VMEM((S * B, H), jnp.float32)],   # hoisted X_proj
    )(x_flat, w_ih, w_hh, bias, w_fc_pad, b_fc_pad)

    return out_pad[:, :O]


def init_params(key, vocab_size, embed_size, hidden_size, output_size):
    ks = jax.random.split(key, 7)
    s_rnn = 1.0 / jnp.sqrt(hidden_size)
    s_fc = 1.0 / jnp.sqrt(hidden_size)
    return {
        "embedding": jax.random.normal(ks[0], (vocab_size, embed_size), jnp.float32),
        # Stored transposed relative to PyTorch (torch W_ih is (H, E)):
        "w_ih": jax.random.uniform(ks[1], (embed_size, hidden_size), jnp.float32, -s_rnn, s_rnn),
        "w_hh": jax.random.uniform(ks[2], (hidden_size, hidden_size), jnp.float32, -s_rnn, s_rnn),
        "b_ih": jax.random.uniform(ks[3], (1, hidden_size), jnp.float32, -s_rnn, s_rnn),
        "b_hh": jax.random.uniform(ks[4], (1, hidden_size), jnp.float32, -s_rnn, s_rnn),
        "w_fc": jax.random.uniform(ks[5], (hidden_size, output_size), jnp.float32, -s_fc, s_fc),
        "b_fc": jax.random.uniform(ks[6], (1, output_size), jnp.float32, -s_fc, s_fc),
    }


def reference_forward(token_ids, params):
    """Pure-JAX reference matching nn.Embedding -> nn.RNN(batch_first) -> fc(last step)."""
    x = jnp.take(params["embedding"], token_ids, axis=0)     # (B, S, E)
    B = x.shape[0]
    H = params["w_hh"].shape[0]
    h0 = jnp.zeros((B, H), jnp.float32)

    def step(h, x_t):
        h_new = jnp.tanh(x_t @ params["w_ih"] + params["b_ih"]
                         + h @ params["w_hh"] + params["b_hh"])
        return h_new, None

    h_last, _ = jax.lax.scan(step, h0, jnp.transpose(x, (1, 0, 2)))
    return h_last @ params["w_fc"] + params["b_fc"]


if __name__ == "__main__":
    key = jax.random.PRNGKey(0)
    k_param, k_tok = jax.random.split(key)

    vocab_size = 50      # small synthetic vocab (len(vocab) + 1 in the original)
    batch, seq = 8, 8

    params = init_params(k_param, vocab_size, EMBED_SIZE, HIDDEN_SIZE, OUTPUT_SIZE)
    token_ids = jax.random.randint(k_tok, (batch, seq), 0, vocab_size, dtype=jnp.int32)

    ref = reference_forward(token_ids, params)

    # f32 path: exact semantics of the PyTorch module.
    out = jax.block_until_ready(sentiment_rnn_forward(token_ids, params))
    assert out.shape == (batch, OUTPUT_SIZE)
    assert jnp.allclose(out, ref, atol=1e-4, rtol=1e-4), "f32 kernel mismatch vs reference"

    # bf16 MXU-feed path (v6e/v7x optimization); hidden carry / accumulation stay f32.
    out_bf16 = jax.block_until_ready(
        sentiment_rnn_forward(token_ids, params, matmul_dtype=jnp.bfloat16))
    assert out_bf16.shape == (batch, OUTPUT_SIZE)
    assert jnp.max(jnp.abs(out_bf16 - ref)) < 5e-2, "bf16 kernel drifted too far"

    print("KERNEL_OK")
</pallas_src>

<mosaic_0001>
module attributes {stable_mosaic.version = 11 : i64} {
  func.func @_rnn_kernel(%arg0: memref<64x128xf32, #tpu.memory_space<vmem>>, %arg1: memref<128x128xf32, #tpu.memory_space<vmem>>, %arg2: memref<128x128xf32, #tpu.memory_space<vmem>>, %arg3: memref<1x128xf32, #tpu.memory_space<vmem>>, %arg4: memref<128x128xf32, #tpu.memory_space<vmem>>, %arg5: memref<1x128xf32, #tpu.memory_space<vmem>>, %arg6: memref<8x128xf32, #tpu.memory_space<vmem>>, %arg7: memref<64x128xf32, #tpu.memory_space<vmem>>) attributes {dimension_semantics = [], scalar_prefetch = 0 : i64, scratch_operands = 1 : i64, tpu.core_type = #tpu.core_type<tc>} {
    %c0 = arith.constant 0 : index
    %c0_0 = arith.constant 0 : index
    %0 = vector.load %arg0[%c0, %c0_0] : memref<64x128xf32, #tpu.memory_space<vmem>>, vector<64x128xf32>
    %c0_1 = arith.constant 0 : index
    %c0_2 = arith.constant 0 : index
    %1 = vector.load %arg1[%c0_1, %c0_2] : memref<128x128xf32, #tpu.memory_space<vmem>>, vector<128x128xf32>
    %cst = arith.constant dense<0.000000e+00> : vector<64x128xf32>
    %2 = tpu.matmul %0, %1, %cst {dimension_numbers = #tpu.dot_dimension_numbers<[1], [0], [0], [1], [0, 0, 1, 1], [], []>} : vector<64x128xf32>, vector<128x128xf32>, vector<64x128xf32> -> vector<64x128xf32>
    %c0_3 = arith.constant 0 : index
    %c0_4 = arith.constant 0 : index
    %3 = vector.load %arg3[%c0_3, %c0_4] : memref<1x128xf32, #tpu.memory_space<vmem>>, vector<1x128xf32>
    %4 = vector.broadcast %3 : vector<1x128xf32> to vector<64x128xf32>
    %5 = arith.addf %2, %4 : vector<64x128xf32>
    %c0_5 = arith.constant 0 : index
    %c0_6 = arith.constant 0 : index
    %6 = vector.load %arg7[%c0_5, %c0_6] : memref<64x128xf32, #tpu.memory_space<vmem>>, vector<64x128xf32>
    tpu.vector_store %arg7[%c0_5, %c0_6], %5 {strides = array<i32>} : memref<64x128xf32, #tpu.memory_space<vmem>>, vector<64x128xf32>,
    %cst_7 = arith.constant 0.000000e+00 : f32
    %7 = vector.broadcast %cst_7 : f32 to vector<8x128xf32>
    %c0_i32 = arith.constant 0 : i32
    %c8_i32 = arith.constant 8 : i32
    %8 = arith.muli %c0_i32, %c8_i32 : i32
    %9 = arith.index_cast %8 : i32 to index
    %c0_8 = arith.constant 0 : index
    %10 = vector.load %arg7[%9, %c0_8] : memref<64x128xf32, #tpu.memory_space<vmem>>, vector<8x128xf32>
    %c0_9 = arith.constant 0 : index
    %c0_10 = arith.constant 0 : index
    %11 = vector.load %arg2[%c0_9, %c0_10] : memref<128x128xf32, #tpu.memory_space<vmem>>, vector<128x128xf32>
    %cst_11 = arith.constant dense<0.000000e+00> : vector<8x128xf32>
    %12 = tpu.matmul %7, %11, %cst_11 {dimension_numbers = #tpu.dot_dimension_numbers<[1], [0], [0], [1], [0, 0, 1, 1], [], []>} : vector<8x128xf32>, vector<128x128xf32>, vector<8x128xf32> -> vector<8x128xf32>
    %13 = arith.addf %10, %12 : vector<8x128xf32>
    %14 = math.tanh %13 : vector<8x128xf32>
    %c1_i32 = arith.constant 1 : i32
    %c8_i32_12 = arith.constant 8 : i32
    %15 = arith.muli %c1_i32, %c8_i32_12 : i32
    %16 = arith.index_cast %15 : i32 to index
    %c0_13 = arith.constant 0 : index
    %17 = vector.load %arg7[%16, %c0_13] : memref<64x128xf32, #tpu.memory_space<vmem>>, vector<8x128xf32>
    %c0_14 = arith.constant 0 : index
    %c0_15 = arith.constant 0 : index
    %18 = vector.load %arg2[%c0_14, %c0_15] : memref<128x128xf32, #tpu.memory_space<vmem>>, vector<128x128xf32>
    %cst_16 = arith.constant dense<0.000000e+00> : vector<8x128xf32>
    %19 = tpu.matmul %14, %18, %cst_16 {dimension_numbers = #tpu.dot_dimension_numbers<[1], [0], [0], [1], [0, 0, 1, 1], [], []>} : vector<8x128xf32>, vector<128x128xf32>, vector<8x128xf32> -> vector<8x128xf32>
    %20 = arith.addf %17, %19 : vector<8x128xf32>
    %21 = math.tanh %20 : vector<8x128xf32>
    %c2_i32 = arith.constant 2 : i32
    %c8_i32_17 = arith.constant 8 : i32
    %22 = arith.muli %c2_i32, %c8_i32_17 : i32
    %23 = arith.index_cast %22 : i32 to index
    %c0_18 = arith.constant 0 : index
    %24 = vector.load %arg7[%23, %c0_18] : memref<64x128xf32, #tpu.memory_space<vmem>>, vector<8x128xf32>
    %c0_19 = arith.constant 0 : index
    %c0_20 = arith.constant 0 : index
    %25 = vector.load %arg2[%c0_19, %c0_20] : memref<128x128xf32, #tpu.memory_space<vmem>>, vector<128x128xf32>
    %cst_21 = arith.constant dense<0.000000e+00> : vector<8x128xf32>
    %26 = tpu.matmul %21, %25, %cst_21 {dimension_numbers = #tpu.dot_dimension_numbers<[1], [0], [0], [1], [0, 0, 1, 1], [], []>} : vector<8x128xf32>, vector<128x128xf32>, vector<8x128xf32> -> vector<8x128xf32>
    %27 = arith.addf %24, %26 : vector<8x128xf32>
    %28 = math.tanh %27 : vector<8x128xf32>
    %c3_i32 = arith.constant 3 : i32
    %c8_i32_22 = arith.constant 8 : i32
    %29 = arith.muli %c3_i32, %c8_i32_22 : i32
    %30 = arith.index_cast %29 : i32 to index
    %c0_23 = arith.constant 0 : index
    %31 = vector.load %arg7[%30, %c0_23] : memref<64x128xf32, #tpu.memory_space<vmem>>, vector<8x128xf32>
    %c0_24 = arith.constant 0 : index
    %c0_25 = arith.constant 0 : index
    %32 = vector.load %arg2[%c0_24, %c0_25] : memref<128x128xf32, #tpu.memory_space<vmem>>, vector<128x128xf32>
    %cst_26 = arith.constant dense<0.000000e+00> : vector<8x128xf32>
    %33 = tpu.matmul %28, %32, %cst_26 {dimension_numbers = #tpu.dot_dimension_numbers<[1], [0], [0], [1], [0, 0, 1, 1], [], []>} : vector<8x128xf32>, vector<128x128xf32>, vector<8x128xf32> -> vector<8x128xf32>
    %34 = arith.addf %31, %33 : vector<8x128xf32>
    %35 = math.tanh %34 : vector<8x128xf32>
    %c4_i32 = arith.constant 4 : i32
    %c8_i32_27 = arith.constant 8 : i32
    %36 = arith.muli %c4_i32, %c8_i32_27 : i32
    %37 = arith.index_cast %36 : i32 to index
    %c0_28 = arith.constant 0 : index
    %38 = vector.load %arg7[%37, %c0_28] : memref<64x128xf32, #tpu.memory_space<vmem>>, vector<8x128xf32>
    %c0_29 = arith.constant 0 : index
    %c0_30 = arith.constant 0 : index
    %39 = vector.load %arg2[%c0_29, %c0_30] : memref<128x128xf32, #tpu.memory_space<vmem>>, vector<128x128xf32>
    %cst_31 = arith.constant dense<0.000000e+00> : vector<8x128xf32>
    %40 = tpu.matmul %35, %39, %cst_31 {dimension_numbers = #tpu.dot_dimension_numbers<[1], [0], [0], [1], [0, 0, 1, 1], [], []>} : vector<8x128xf32>, vector<128x128xf32>, vector<8x128xf32> -> vector<8x128xf32>
    %41 = arith.addf %38, %40 : vector<8x128xf32>
    %42 = math.tanh %41 : vector<8x128xf32>
    %c5_i32 = arith.constant 5 : i32
    %c8_i32_32 = arith.constant 8 : i32
    %43 = arith.muli %c5_i32, %c8_i32_32 : i32
    %44 = arith.index_cast %43 : i32 to index
    %c0_33 = arith.constant 0 : index
    %45 = vector.load %arg7[%44, %c0_33] : memref<64x128xf32, #tpu.memory_space<vmem>>, vector<8x128xf32>
    %c0_34 = arith.constant 0 : index
    %c0_35 = arith.constant 0 : index
    %46 = vector.load %arg2[%c0_34, %c0_35] : memref<128x128xf32, #tpu.memory_space<vmem>>, vector<128x128xf32>
    %cst_36 = arith.constant dense<0.000000e+00> : vector<8x128xf32>
    %47 = tpu.matmul %42, %46, %cst_36 {dimension_numbers = #tpu.dot_dimension_numbers<[1], [0], [0], [1], [0, 0, 1, 1], [], []>} : vector<8x128xf32>, vector<128x128xf32>, vector<8x128xf32> -> vector<8x128xf32>
    %48 = arith.addf %45, %47 : vector<8x128xf32>
    %49 = math.tanh %48 : vector<8x128xf32>
    %c6_i32 = arith.constant 6 : i32
    %c8_i32_37 = arith.constant 8 : i32
    %50 = arith.muli %c6_i32, %c8_i32_37 : i32
    %51 = arith.index_cast %50 : i32 to index
    %c0_38 = arith.constant 0 : index
    %52 = vector.load %arg7[%51, %c0_38] : memref<64x128xf32, #tpu.memory_space<vmem>>, vector<8x128xf32>
    %c0_39 = arith.constant 0 : index
    %c0_40 = arith.constant 0 : index
    %53 = vector.load %arg2[%c0_39, %c0_40] : memref<128x128xf32, #tpu.memory_space<vmem>>, vector<128x128xf32>
    %cst_41 = arith.constant dense<0.000000e+00> : vector<8x128xf32>
    %54 = tpu.matmul %49, %53, %cst_41 {dimension_numbers = #tpu.dot_dimension_numbers<[1], [0], [0], [1], [0, 0, 1, 1], [], []>} : vector<8x128xf32>, vector<128x128xf32>, vector<8x128xf32> -> vector<8x128xf32>
    %55 = arith.addf %52, %54 : vector<8x128xf32>
    %56 = math.tanh %55 : vector<8x128xf32>
    %c7_i32 = arith.constant 7 : i32
    %c8_i32_42 = arith.constant 8 : i32
    %57 = arith.muli %c7_i32, %c8_i32_42 : i32
    %58 = arith.index_cast %57 : i32 to index
    %c0_43 = arith.constant 0 : index
    %59 = vector.load %arg7[%58, %c0_43] : memref<64x128xf32, #tpu.memory_space<vmem>>, vector<8x128xf32>
    %c0_44 = arith.constant 0 : index
    %c0_45 = arith.constant 0 : index
    %60 = vector.load %arg2[%c0_44, %c0_45] : memref<128x128xf32, #tpu.memory_space<vmem>>, vector<128x128xf32>
    %cst_46 = arith.constant dense<0.000000e+00> : vector<8x128xf32>
    %61 = tpu.matmul %56, %60, %cst_46 {dimension_numbers = #tpu.dot_dimension_numbers<[1], [0], [0], [1], [0, 0, 1, 1], [], []>} : vector<8x128xf32>, vector<128x128xf32>, vector<8x128xf32> -> vector<8x128xf32>
    %62 = arith.addf %59, %61 : vector<8x128xf32>
    %63 = math.tanh %62 : vector<8x128xf32>
    %c8_i32_47 = arith.constant 8 : i32
    %c0_48 = arith.constant 0 : index
    %c0_49 = arith.constant 0 : index
    %64 = vector.load %arg4[%c0_48, %c0_49] : memref<128x128xf32, #tpu.memory_space<vmem>>, vector<128x128xf32>
    %cst_50 = arith.constant dense<0.000000e+00> : vector<8x128xf32>
    %65 = tpu.matmul %63, %64, %cst_50 {dimension_numbers = #tpu.dot_dimension_numbers<[1], [0], [0], [1], [0, 0, 1, 1], [], []>} : vector<8x128xf32>, vector<128x128xf32>, vector<8x128xf32> -> vector<8x128xf32>
    %c0_51 = arith.constant 0 : index
    %c0_52 = arith.constant 0 : index
    %66 = vector.load %arg5[%c0_51, %c0_52] : memref<1x128xf32, #tpu.memory_space<vmem>>, vector<1x128xf32>
    %67 = vector.broadcast %66 : vector<1x128xf32> to vector<8x128xf32>
    %68 = arith.addf %65, %67 : vector<8x128xf32>
    %c0_53 = arith.constant 0 : index
    %c0_54 = arith.constant 0 : index
    %69 = vector.load %arg6[%c0_53, %c0_54] : memref<8x128xf32, #tpu.memory_space<vmem>>, vector<8x128xf32>
    tpu.vector_store %arg6[%c0_53, %c0_54], %68 {strides = array<i32>} : memref<8x128xf32, #tpu.memory_space<vmem>>, vector<8x128xf32>,
    return
  }
}

</mosaic_0001>

<bundles_post_ra>
// kernel: tpu_custom_call.1
= control target key start
LH: loop header
LB: loop body
LE: loop exit
PB: predicated region body
PF: predicated region fallthrough
CT: control target
= control target key end

     0   :  { %11 = vsyncpa [#allocation4], 0  ;;  %s812_s0 = inlined_call_operand.hbm [shape: f32[64,128], index: 0, kind: input, shape index: {}]   ;;  %s813_s1 = inlined_call_operand.hbm [shape: f32[128,128], index: 1, kind: input, shape index: {}]   ;;  %s814_s2 = inlined_call_operand.hbm [shape: f32[128,128], index: 2, kind: input, shape index: {}]   ;;  %s815_s3 = inlined_call_operand.vmem [shape: f32[1,128], index: 3, kind: input, shape index: {}]   ;;  %s816_s4 = inlined_call_operand.hbm [shape: f32[128,128], index: 4, kind: input, shape index: {}]   ;;  %s817_s5 = inlined_call_operand.vmem [shape: f32[1,128], index: 5, kind: input, shape index: {}]   ;;  %s818_s6 = inlined_call_operand.hbm [shape: f32[8,128], index: 6, kind: output, shape index: {}]  }
   0x1   :  { %12 = vsyncpa [#allocation7], 0 }
   0x2   :  { %13 = vsyncpa [#allocation10], 0 }
   0x3   :  { %14 = vsyncpa [#allocation5], 0  ;;  %s32_s23 = sshll.u32 %s813_s1, 4  ;;  %s578_s24 = smov [#allocation6]   ;;  %s33_s23 = int_to_ptr.hbm [resolvable:$true] %s32_s23 }
   0x4   :  { %s34_s25 = sshll.u32 %s578_s24, 4  ;;  %s19_s28 = sshll.u32 %s812_s0, 4  ;;  %s35_s25 = int_to_ptr.vmem [resolvable:$true] %s34_s25  ;;  %s20_s28 = int_to_ptr.hbm [resolvable:$true] %s19_s28 }
   0x5   :  { %s579_s29 = smov 128   ;;  %s580_s30 = smov 8  }
   0x6   :  { %40 = dma.hbm_to_vmem [thread:$0]  %s33_s23, 2048, %s35_s25, [#allocation7], %s579_s29, %s579_s29, %s580_s30  }
   0x7   :  { %s581_s7 = smov [#allocation3]   ;;  %s45_s11 = sshll.u32 %s814_s2, 4  ;;  %s46_s11 = int_to_ptr.hbm [resolvable:$true] %s45_s11 }
   0x8   :  { %s21_s8 = sshll.u32 %s581_s7, 4  ;;  %s60_s13 = sshll.u32 %s816_s4, 4  ;;  %s22_s8 = int_to_ptr.vmem [resolvable:$true] %s21_s8  ;;  %s61_s13 = int_to_ptr.hbm [resolvable:$true] %s60_s13 }
   0x9   :  { %27 = dma.hbm_to_vmem [thread:$0]  %s20_s28, 1024, %s22_s8, [#allocation4], %s579_s29, %s579_s29, %s580_s30  }
   0xa   :  { %s582_s14 = smov [#allocation8]   ;;  %s583_s0 = smov [#allocation9]  }
   0xb   :  { %s47_s15 = sshll.u32 %s582_s14, 4  ;;  %s62_s16 = sshll.u32 %s583_s0, 4  ;;  %s48_s15 = int_to_ptr.vmem [resolvable:$true] %s47_s15  ;;  %s63_s16 = int_to_ptr.vmem [resolvable:$true] %s62_s16 }
   0xc   :  { %53 = dma.hbm_to_vmem [thread:$0]  %s46_s11, 2048, %s48_s15, [#allocation7], %s579_s29, %s579_s29, %s580_s30  }
   0xd   :  { %68 = dma.hbm_to_vmem [thread:$0]  %s61_s13, 2048, %s63_s16, [#allocation10], %s579_s29, %s579_s29, %s580_s30  }
   0xe   :  { %570 = dma.done.wait [#allocation4], 1024  }
   0xf   :  { %571 = vsyncadd [#allocation4], 4294966272 }
  0x10   :  { %572 = dma.done.wait [#allocation7], 4096  }
  0x11   :  { %573 = vsyncadd [#allocation7], 4294963200 }
  0x12   :  { %574 = dma.done.wait [#allocation10], 2048  }
  0x13   :  { %575 = vsyncadd [#allocation10], 4294965248  ;;  %v110_v0 = vld [vmem:[#allocation6 + $0x78] sm:$0xff]  ;;  %v109_v1 = vld [vmem:[#allocation6 + $0x70] sm:$0xff]  ;;  %v584_v33 = vmov 0.0   ;;  %s585_s18 = smov [#allocation11]  }
  0x14   :  { %v633_v2 = vld [vmem:[#allocation8 + $0x78] sm:$0xff]  ;;  %115 = vmatpush.msra.mxu0 %v110_v0  ;;  %v636_v3 = vld [vmem:[#allocation8 + $0x70] sm:$0xff]  ;;  %v108_v4 = vld [vmem:[#allocation6 + $0x68] sm:$0xff]  ;;  %s410_s19 = sshll.u32 %s585_s18, 4  ;;  %s412_s22 = sshll.u32 %s818_s6, 4  ;;  %s411_s19 = int_to_ptr.vmem [resolvable:$true] %s410_s19  ;;  %s413_s22 = int_to_ptr.hbm [resolvable:$true] %s412_s22 }
  0x15   :  { %181 = vmatpush.msra.mxu1 %v633_v2  ;;  %v638_v5 = vld [vmem:[#allocation8 + $0x68] sm:$0xff]  ;;  %204 = vmatpush.msra.mxu2 %v633_v2  ;;  %v107_v6 = vld [vmem:[#allocation6 + $0x60] sm:$0xff]  ;;  %v106_v8 = vld [vmem:[#allocation6 + $0x58] sm:$0xff] }
  0x16   :  { %227 = vmatpush.msra.mxu3 %v633_v2  ;;  %116 = vmatpush.msra.mxu0 %v109_v1  ;;  %v643_v7 = vld [vmem:[#allocation8 + $0x60] sm:$0xff]  ;;  %v648_v9 = vld [vmem:[#allocation8 + $0x58] sm:$0xff]  ;;  %v105_v10 = vld [vmem:[#allocation6 + $0x50] sm:$0xff] }
  0x17   :  { %182 = vmatpush.msra.mxu1 %v636_v3  ;;  %205 = vmatpush.msra.mxu2 %v636_v3  ;;  %v653_v11 = vld [vmem:[#allocation8 + $0x50] sm:$0xff]  ;;  %v104_v12 = vld [vmem:[#allocation6 + $0x48] sm:$0xff]  ;;  %v103_v14 = vld [vmem:[#allocation6 + $0x40] sm:$0xff] }
  0x18   :  { %228 = vmatpush.msra.mxu3 %v636_v3  ;;  %117 = vmatpush.msra.mxu0 %v108_v4  ;;  %v658_v13 = vld [vmem:[#allocation8 + $0x48] sm:$0xff]  ;;  %v663_v15 = vld [vmem:[#allocation8 + $0x40] sm:$0xff]  ;;  %v102_v16 = vld [vmem:[#allocation6 + $0x38] sm:$0xff] }
  0x19   :  { %183 = vmatpush.msra.mxu1 %v638_v5  ;;  %206 = vmatpush.msra.mxu2 %v638_v5  ;;  %v668_v17 = vld [vmem:[#allocation8 + $0x38] sm:$0xff]  ;;  %v101_v18 = vld [vmem:[#allocation6 + $0x30] sm:$0xff]  ;;  %v100_v20 = vld [vmem:[#allocation6 + $0x28] sm:$0xff] }
  0x1a   :  { %229 = vmatpush.msra.mxu3 %v638_v5  ;;  %118 = vmatpush.msra.mxu0 %v107_v6  ;;  %v673_v19 = vld [vmem:[#allocation8 + $0x30] sm:$0xff]  ;;  %v678_v21 = vld [vmem:[#allocation8 + $0x28] sm:$0xff]  ;;  %v99_v22 = vld [vmem:[#allocation6 + $0x20] sm:$0xff] }
  0x1b   :  { %184 = vmatpush.msra.mxu1 %v643_v7  ;;  %207 = vmatpush.msra.mxu2 %v643_v7  ;;  %v683_v23 = vld [vmem:[#allocation8 + $0x20] sm:$0xff]  ;;  %v98_v24 = vld [vmem:[#allocation6 + $0x18] sm:$0xff]  ;;  %v97_v26 = vld [vmem:[#allocation6 + $0x10] sm:$0xff] }
  0x1c   :  { %230 = vmatpush.msra.mxu3 %v643_v7  ;;  %119 = vmatpush.msra.mxu0 %v106_v8  ;;  %v688_v25 = vld [vmem:[#allocation8 + $0x18] sm:$0xff]  ;;  %v693_v27 = vld [vmem:[#allocation8 + $0x10] sm:$0xff]  ;;  %v96_v28 = vld [vmem:[#allocation6 + $0x8] sm:$0xff] }
  0x1d   :  { %185 = vmatpush.msra.mxu1 %v648_v9  ;;  %208 = vmatpush.msra.mxu2 %v648_v9  ;;  %v698_v29 = vld [vmem:[#allocation8 + $0x8] sm:$0xff]  ;;  %v95_v30 = vld [vmem:[#allocation6] sm:$0xff]  ;;  %v89_v41 = vld [vmem:[#allocation3 + $0x10] sm:$0xff] }
  0x1e   :  { %231 = vmatpush.msra.mxu3 %v648_v9  ;;  %120 = vmatpush.msra.mxu0 %v105_v10  ;;  %v703_v31 = vld [vmem:[#allocation8] sm:$0xff]  ;;  %v88_v34 = vld [vmem:[#allocation3 + $0x8] sm:$0xff]  ;;  %v90_v47 = vld [vmem:[#allocation3 + $0x18] sm:$0xff] }
  0x1f   :  { %186 = vmatpush.msra.mxu1 %v653_v11  ;;  %209 = vmatpush.msra.mxu2 %v653_v11  ;;  %v87_v32 = vld [vmem:[#allocation3] sm:$0xff]  ;;  %v92_v59 = vld [vmem:[#allocation3 + $0x28] sm:$0xff]  ;;  %v93_v60 = vld [vmem:[#allocation3 + $0x30] sm:$0xff] }
  0x20   :  { %232 = vmatpush.msra.mxu3 %v653_v11  ;;  %121 = vmatpush.msra.mxu0 %v104_v12  ;;  %v796_v35 = vld [vmem:[%s815_s3] ss:$0 sm:$0xff]  ;;  %v379_v8 = vld [vmem:[#allocation9 + $0x78] sm:$0xff] }
  0x21   :  { %187 = vmatpush.msra.mxu1 %v658_v13  ;;  %210 = vmatpush.msra.mxu2 %v658_v13  ;;  %v91_v53 = vld [vmem:[#allocation3 + $0x20] sm:$0xff] }
  0x22   :  { %233 = vmatpush.msra.mxu3 %v658_v13  ;;  %122 = vmatpush.msra.mxu0 %v103_v14  ;;  %v376_v12 = vld [vmem:[#allocation9 + $0x60] sm:$0xff]  ;;  %v374_v14 = vld [vmem:[#allocation9 + $0x50] sm:$0xff] }
  0x23   :  { %188 = vmatpush.msra.mxu1 %v663_v15  ;;  %211 = vmatpush.msra.mxu2 %v663_v15 }
  0x24   :  { %234 = vmatpush.msra.mxu3 %v663_v15  ;;  %123 = vmatpush.msra.mxu0 %v102_v16 }
  0x25   :  { %189 = vmatpush.msra.mxu1 %v668_v17  ;;  %212 = vmatpush.msra.mxu2 %v668_v17 }
  0x26   :  { %235 = vmatpush.msra.mxu3 %v668_v17  ;;  %124 = vmatpush.msra.mxu0 %v101_v18  ;;  %v371_v18 = vld [vmem:[#allocation9 + $0x38] sm:$0xff] }
  0x27   :  { %190 = vmatpush.msra.mxu1 %v673_v19  ;;  %213 = vmatpush.msra.mxu2 %v673_v19 }
  0x28   :  { %236 = vmatpush.msra.mxu3 %v673_v19  ;;  %125 = vmatpush.msra.mxu0 %v100_v20  ;;  %v369_v20 = vld [vmem:[#allocation9 + $0x28] sm:$0xff] }
  0x29   :  { %191 = vmatpush.msra.mxu1 %v678_v21  ;;  %214 = vmatpush.msra.mxu2 %v678_v21 }
  0x2a   :  { %237 = vmatpush.msra.mxu3 %v678_v21  ;;  %126 = vmatpush.msra.mxu0 %v99_v22 }
  0x2b   :  { %192 = vmatpush.msra.mxu1 %v683_v23  ;;  %215 = vmatpush.msra.mxu2 %v683_v23 }
  0x2c   :  { %238 = vmatpush.msra.mxu3 %v683_v23  ;;  %127 = vmatpush.msra.mxu0 %v98_v24 }
  0x2d   :  { %193 = vmatpush.msra.mxu1 %v688_v25  ;;  %216 = vmatpush.msra.mxu2 %v688_v25 }
  0x2e   :  { %239 = vmatpush.msra.mxu3 %v688_v25  ;;  %128 = vmatpush.msra.mxu0 %v97_v26  ;;  %v367_v26 = vld [vmem:[#allocation9 + $0x18] sm:$0xff] }
  0x2f   :  { %194 = vmatpush.msra.mxu1 %v693_v27  ;;  %217 = vmatpush.msra.mxu2 %v693_v27 }
  0x30   :  { %240 = vmatpush.msra.mxu3 %v693_v27  ;;  %129 = vmatpush.msra.mxu0 %v96_v28  ;;  %v365_v28 = vld [vmem:[#allocation9 + $0x8] sm:$0xff] }
  0x31   :  { %195 = vmatpush.msra.mxu1 %v698_v29  ;;  %218 = vmatpush.msra.mxu2 %v698_v29 }
  0x32   :  { %241 = vmatpush.msra.mxu3 %v698_v29  ;;  %130 = vmatpush.msra.mxu0 %v95_v30 }
  0x33   :  { %196 = vmatpush.msra.mxu1 %v703_v31  ;;  %131 = vmatmul.f32.vlgmr.msra.gmra.mxu0 %v87_v32 }
  0x34   :  { %197 = vmatmul.f32.vlgmr.msra.gmra.mxu1 %v584_v33  ;;  %219 = vmatpush.msra.mxu2 %v703_v31 }
  0x35   :  { %242 = vmatpush.msra.mxu3 %v703_v31  ;;  %250 = vmatpush.msrb.mxu1 %v633_v2 }
  0x36   :  { %273 = vmatpush.msrb.mxu2 %v633_v2  ;;  %319 = vmatpush.msrb.mxu0 %v633_v2 }
  0x37   :  { %296 = vmatpush.msrb.mxu3 %v633_v2  ;;  %251 = vmatpush.msrb.mxu1 %v636_v3 }
  0x38   :  { %274 = vmatpush.msrb.mxu2 %v636_v3  ;;  %320 = vmatpush.msrb.mxu0 %v636_v3 }
  0x39   :  { %297 = vmatpush.msrb.mxu3 %v636_v3  ;;  %252 = vmatpush.msrb.mxu1 %v638_v5 }
  0x3a   :  { %275 = vmatpush.msrb.mxu2 %v638_v5  ;;  %321 = vmatpush.msrb.mxu0 %v638_v5 }
  0x3b   :  { %298 = vmatpush.msrb.mxu3 %v638_v5  ;;  %253 = vmatpush.msrb.mxu1 %v643_v7 }
  0x3c   :  { %276 = vmatpush.msrb.mxu2 %v643_v7  ;;  %322 = vmatpush.msrb.mxu0 %v643_v7 }
  0x3d   :  { %299 = vmatpush.msrb.mxu3 %v643_v7  ;;  %254 = vmatpush.msrb.mxu1 %v648_v9 }
  0x3e   :  { %277 = vmatpush.msrb.mxu2 %v648_v9  ;;  %323 = vmatpush.msrb.mxu0 %v648_v9 }
  0x3f   :  { %300 = vmatpush.msrb.mxu3 %v648_v9  ;;  %255 = vmatpush.msrb.mxu1 %v653_v11 }
  0x40   :  { %278 = vmatpush.msrb.mxu2 %v653_v11  ;;  %324 = vmatpush.msrb.mxu0 %v653_v11 }
  0x41   :  { %301 = vmatpush.msrb.mxu3 %v653_v11  ;;  %256 = vmatpush.msrb.mxu1 %v658_v13 }
  0x42   :  { %279 = vmatpush.msrb.mxu2 %v658_v13  ;;  %325 = vmatpush.msrb.mxu0 %v658_v13 }
  0x43   :  { %302 = vmatpush.msrb.mxu3 %v658_v13  ;;  %257 = vmatpush.msrb.mxu1 %v663_v15 }
  0x44   :  { %280 = vmatpush.msrb.mxu2 %v663_v15  ;;  %326 = vmatpush.msrb.mxu0 %v663_v15 }
  0x45   :  { %303 = vmatpush.msrb.mxu3 %v663_v15  ;;  %258 = vmatpush.msrb.mxu1 %v668_v17 }
  0x46   :  { %281 = vmatpush.msrb.mxu2 %v668_v17  ;;  %327 = vmatpush.msrb.mxu0 %v668_v17 }
  0x47   :  { %304 = vmatpush.msrb.mxu3 %v668_v17  ;;  %259 = vmatpush.msrb.mxu1 %v673_v19 }
  0x48   :  { %282 = vmatpush.msrb.mxu2 %v673_v19  ;;  %328 = vmatpush.msrb.mxu0 %v673_v19 }
  0x49   :  { %305 = vmatpush.msrb.mxu3 %v673_v19  ;;  %260 = vmatpush.msrb.mxu1 %v678_v21 }
  0x4a   :  { %283 = vmatpush.msrb.mxu2 %v678_v21  ;;  %329 = vmatpush.msrb.mxu0 %v678_v21 }
  0x4b   :  { %306 = vmatpush.msrb.mxu3 %v678_v21  ;;  %261 = vmatpush.msrb.mxu1 %v683_v23 }
  0x4c   :  { %284 = vmatpush.msrb.mxu2 %v683_v23  ;;  %330 = vmatpush.msrb.mxu0 %v683_v23 }
  0x4d   :  { %307 = vmatpush.msrb.mxu3 %v683_v23  ;;  %262 = vmatpush.msrb.mxu1 %v688_v25 }
  0x4e   :  { %285 = vmatpush.msrb.mxu2 %v688_v25  ;;  %331 = vmatpush.msrb.mxu0 %v688_v25 }
  0x4f   :  { %308 = vmatpush.msrb.mxu3 %v688_v25  ;;  %263 = vmatpush.msrb.mxu1 %v693_v27 }
  0x50   :  { %286 = vmatpush.msrb.mxu2 %v693_v27  ;;  %332 = vmatpush.msrb.mxu0 %v693_v27 }
  0x51   :  { %309 = vmatpush.msrb.mxu3 %v693_v27  ;;  %264 = vmatpush.msrb.mxu1 %v698_v29 }
  0x52   :  { %287 = vmatpush.msrb.mxu2 %v698_v29  ;;  %333 = vmatpush.msrb.mxu0 %v698_v29 }
  0x53   :  { %310 = vmatpush.msrb.mxu3 %v698_v29  ;;  %265 = vmatpush.msrb.mxu1 %v703_v31 }
  0x54   :  { %288 = vmatpush.msrb.mxu2 %v703_v31  ;;  %334 = vmatpush.msrb.mxu0 %v703_v31 }
  0x55   :  { %311 = vmatpush.msrb.mxu3 %v703_v31  ;;  %342 = vmatpush.msra.mxu1 %v633_v2  ;;  %v94_v2 = vld [vmem:[#allocation3 + $0x38] sm:$0xff] }
  0x56   :  { %134 = vmatmul.f32.gmra.mxu0 %v88_v34  ;;  %v433_v34 = vld [vmem:[%s817_s5] ss:$0 sm:$0xff] }
  0x57   :  { %343 = vmatpush.msra.mxu1 %v636_v3 }
  0x59   :  { %344 = vmatpush.msra.mxu1 %v638_v5 }
  0x5b   :  { %345 = vmatpush.msra.mxu1 %v643_v7 }
  0x5d   :  { %346 = vmatpush.msra.mxu1 %v648_v9  ;;  %v378_v9 = vld [vmem:[#allocation9 + $0x70] sm:$0xff] }
  0x5e   :  { %137 = vmatmul.f32.gmra.mxu0 %v89_v41 }
  0x5f   :  { %347 = vmatpush.msra.mxu1 %v653_v11  ;;  %v377_v11 = vld [vmem:[#allocation9 + $0x68] sm:$0xff] }
  0x61   :  { %348 = vmatpush.msra.mxu1 %v658_v13  ;;  %v375_v13 = vld [vmem:[#allocation9 + $0x58] sm:$0xff] }
  0x63   :  { %349 = vmatpush.msra.mxu1 %v663_v15  ;;  %v373_v15 = vld [vmem:[#allocation9 + $0x48] sm:$0xff] }
  0x65   :  { %350 = vmatpush.msra.mxu1 %v668_v17  ;;  %v372_v17 = vld [vmem:[#allocation9 + $0x40] sm:$0xff] }
  0x66   :  { %140 = vmatmul.f32.gmra.mxu0 %v90_v47 }
  0x67   :  { %351 = vmatpush.msra.mxu1 %v673_v19  ;;  %v370_v19 = vld [vmem:[#allocation9 + $0x30] sm:$0xff] }
  0x69   :  { %352 = vmatpush.msra.mxu1 %v678_v21 }
  0x6b   :  { %353 = vmatpush.msra.mxu1 %v683_v23 }
  0x6d   :  { %354 = vmatpush.msra.mxu1 %v688_v25  ;;  %v368_v25 = vld [vmem:[#allocation9 + $0x20] sm:$0xff] }
  0x6e   :  { %143 = vmatmul.f32.gmra.mxu0 %v91_v53 }
  0x6f   :  { %355 = vmatpush.msra.mxu1 %v693_v27  ;;  %v366_v27 = vld [vmem:[#allocation9 + $0x10] sm:$0xff] }
  0x71   :  { %356 = vmatpush.msra.mxu1 %v698_v29  ;;  %v364_v29 = vld [vmem:[#allocation9] sm:$0xff] }
  0x73   :  { %357 = vmatpush.msra.mxu1 %v703_v31 }
  0x76   :  { %146 = vmatmul.f32.gmra.mxu0 %v92_v59 }
  0x7e   :  { %149 = vmatmul.f32.gmra.mxu0 %v93_v60 }
  0x86   :  { %152 = vmatmul.f32.gmra.mxu0 %v94_v2 }
  0xb0   :  { %v132_v36 = vpop.f32.mrf.mxu0 }
  0xb1   :  { %v198_v37 = vpop.f32.mrf.mxu1  ;;  %v133_v38 = vadd.f32 %v796_v35, %v132_v36 }
  0xb3   :  { %v201_v39 = vadd.f32 %v198_v37, %v133_v38 }
  0xb5   :  { %434 = vtanh.f32 %v201_v39 }
  0xbb   :  { %v435_v40 = vpop.eup %434 }
  0xbc   :  { %220 = vmatmul.f32.vlgmr.msra.gmra.mxu2 %v435_v40 }
  0xbd   :  { %384 = vmatpush.msra.mxu2 %v379_v8 }
  0xbf   :  { %385 = vmatpush.msra.mxu2 %v378_v9 }
  0xc1   :  { %386 = vmatpush.msra.mxu2 %v377_v11 }
  0xc3   :  { %387 = vmatpush.msra.mxu2 %v376_v12 }
  0xc5   :  { %388 = vmatpush.msra.mxu2 %v375_v13 }
  0xc7   :  { %389 = vmatpush.msra.mxu2 %v374_v14 }
  0xc9   :  { %390 = vmatpush.msra.mxu2 %v373_v15 }
  0xcb   :  { %391 = vmatpush.msra.mxu2 %v372_v17 }
  0xcd   :  { %392 = vmatpush.msra.mxu2 %v371_v18 }
  0xcf   :  { %393 = vmatpush.msra.mxu2 %v370_v19 }
  0xd1   :  { %394 = vmatpush.msra.mxu2 %v369_v20 }
  0xd3   :  { %v135_v42 = vpop.f32.mrf.mxu0  ;;  %395 = vmatpush.msra.mxu2 %v368_v25 }
  0xd4   :  { %v136_v43 = vadd.f32 %v796_v35, %v135_v42 }
  0xd5   :  { %396 = vmatpush.msra.mxu2 %v367_v26 }
  0xd7   :  { %397 = vmatpush.msra.mxu2 %v366_v27 }
  0xd9   :  { %398 = vmatpush.msra.mxu2 %v365_v28 }
  0xdb   :  { %v138_v48 = vpop.f32.mrf.mxu0  ;;  %399 = vmatpush.msra.mxu2 %v364_v29 }
  0xdc   :  { %v139_v49 = vadd.f32 %v796_v35, %v138_v48 }
  0xe3   :  { %v141_v54 = vpop.f32.mrf.mxu0 }
  0xe4   :  { %v142_v55 = vadd.f32 %v796_v35, %v141_v54 }
  0xeb   :  { %v144_v61 = vpop.f32.mrf.mxu0 }
  0xec   :  { %v145_v62 = vadd.f32 %v796_v35, %v144_v61 }
  0xf3   :  { %v147_v3 = vpop.f32.mrf.mxu0 }
  0xf4   :  { %v148_v4 = vadd.f32 %v796_v35, %v147_v3 }
  0xfb   :  { %v150_v10 = vpop.f32.mrf.mxu0 }
  0xfc   :  { %v151_v21 = vadd.f32 %v796_v35, %v150_v10 }
 0x103   :  { %v153_v16 = vpop.f32.mrf.mxu0 }
 0x104   :  { %v154_v30 = vadd.f32 %v796_v35, %v153_v16 }
 0x13f   :  { %v221_v44 = vpop.f32.mrf.mxu2 }
 0x140   :  { %v224_v45 = vadd.f32 %v221_v44, %v136_v43 }
 0x142   :  { %436 = vtanh.f32 %v224_v45 }
 0x148   :  { %v437_v46 = vpop.eup %436 }
 0x149   :  { %243 = vmatmul.f32.vlgmr.msra.gmra.mxu3 %v437_v46 }
 0x1cc   :  { %v244_v50 = vpop.f32.mrf.mxu3 }
 0x1cd   :  { %v247_v51 = vadd.f32 %v244_v50, %v139_v49 }
 0x1cf   :  { %438 = vtanh.f32 %v247_v51 }
 0x1d5   :  { %v439_v52 = vpop.eup %438 }
 0x1d6   :  { %266 = vmatmul.f32.vlgmr.msrb.gmra.mxu1 %v439_v52 }
 0x253   :  { %v267_v56 = vpop.f32.mrf.mxu1 }
 0x254   :  { %v270_v57 = vadd.f32 %v267_v56, %v142_v55 }
 0x256   :  { %440 = vtanh.f32 %v270_v57 }
 0x25c   :  { %v441_v58 = vpop.eup %440 }
 0x25d   :  { %289 = vmatmul.f32.vlgmr.msrb.gmra.mxu2 %v441_v58 }
 0x2e0   :  { %v290_v63 = vpop.f32.mrf.mxu2 }
 0x2e1   :  { %v293_v0 = vadd.f32 %v290_v63, %v145_v62 }
 0x2e3   :  { %442 = vtanh.f32 %v293_v0 }
 0x2e9   :  { %v443_v1 = vpop.eup %442 }
 0x2ea   :  { %312 = vmatmul.f32.vlgmr.msrb.gmra.mxu3 %v443_v1 }
 0x36d   :  { %v313_v5 = vpop.f32.mrf.mxu3 }
 0x36e   :  { %v316_v6 = vadd.f32 %v313_v5, %v148_v4 }
 0x370   :  { %444 = vtanh.f32 %v316_v6 }
 0x376   :  { %v445_v7 = vpop.eup %444 }
 0x377   :  { %335 = vmatmul.f32.vlgmr.msrb.gmra.mxu0 %v445_v7 }
 0x3f4   :  { %v336_v22 = vpop.f32.mrf.mxu0 }
 0x3f5   :  { %v339_v23 = vadd.f32 %v336_v22, %v151_v21 }
 0x3f7   :  { %446 = vtanh.f32 %v339_v23 }
 0x3fd   :  { %v447_v24 = vpop.eup %446 }
 0x3fe   :  { %358 = vmatmul.f32.vlgmr.msra.gmra.mxu1 %v447_v24 }
 0x47b   :  { %v359_v31 = vpop.f32.mrf.mxu1 }
 0x47c   :  { %v362_v32 = vadd.f32 %v359_v31, %v154_v30 }
 0x47e   :  { %448 = vtanh.f32 %v362_v32 }
 0x484   :  { %v449_v33 = vpop.eup %448 }
 0x485   :  { %400 = vmatmul.f32.vlgmr.msra.gmra.mxu2 %v449_v33 }
 0x508   :  { %v401_v36 = vpop.f32.mrf.mxu2 }
 0x509   :  { %v402_v37 = vadd.f32 %v433_v34, %v401_v36 }
 0x50b   :  { %404 = vst [vmem:[#allocation11] sm:$0xff] %v402_v37 }
 0x50c   :  { %415 = dma.vmem_to_hbm [thread:$0]  %s411_s19, 128, %s413_s22, [#allocation5]  }
 0x50d   :  { %576 = dma.done.wait [#allocation5], 128  }
 0x50e   :  { %577 = vsyncadd [#allocation5], 4294967168 }
 0x50f   :  { %420 = vsyncpa [#allocation4], 1 }
 0x510   :  { %421 = vsyncpa [#allocation7], 1 }
 0x511   :  { %422 = vsyncpa [#allocation10], 1 }
 0x512   :  { %423 = vsyncpa [#allocation5], 1 }

</bundles_post_ra>
